<compile_context>
chip_gen: v7x
topology: tpu7x:2x2x1
jax: 0.10.0
libtpu: 0.0.40
codegen_flags: <defaults>
</compile_context>

<pallas_src>
import functools

import jax
import jax.numpy as jnp
from jax.experimental import pallas as pl
from jax.experimental.pallas import tpu as pltpu

_LANE = 128
_SUBLANE = 8
# Target HBM->VMEM block size per input per grid step (~4 MiB).  Double
# buffered over two inputs this is ~16 MiB of VMEM, inside the 32 MiB scoped
# limit we request below on every generation (v5e/v6e/v7x).
_TARGET_BLOCK_BYTES = 4 * 1024 * 1024
# Below this many combined input bytes, a fused XLA reduction wins.
_MIN_PALLAS_BYTES = 1 << 20


def _partial_sq_diff_kernel(p_ref, y_ref, o_ref, *, num_tiles, last_tile_rows):
    """Writes this tile's per-lane sum((pred - y)^2) into row 0 of o_ref.

    o_ref is an (8, 128) f32 block: row 0 holds the 128 per-lane partial sums
    for this tile, rows 1..7 are zero (kept so the store is a full, unmasked
    lane-dense block).  The final cross-lane / cross-tile sum, the divide by N
    and the sqrt happen in the wrapper.
    """
    d = p_ref[...].astype(jnp.float32) - y_ref[...].astype(jnp.float32)

    def write_partial(dd):
        part = jnp.sum(dd * dd, axis=0, keepdims=True)            # (1, 128)
        row0 = jax.lax.broadcasted_iota(jnp.int32, o_ref.shape, 0) == 0
        o_ref[...] = jnp.where(row0, part, jnp.float32(0.0))      # (8, 128)

    if last_tile_rows is None:
        # All tiles are full: unmasked fast path (no iota/cmp/select per
        # element in the hot loop -> stays HBM-bound even for bf16 on v7x).
        write_partial(d)
    else:
        i = pl.program_id(0)

        @pl.when(i < num_tiles - 1)
        def _():
            write_partial(d)

        @pl.when(i == num_tiles - 1)
        def _():
            # Ragged final tile: rows past the end of the array are undefined
            # VMEM.  Mask d itself (not d*d) so garbage Inf/NaN cannot leak.
            rid = jax.lax.broadcasted_iota(jnp.int32, d.shape, 0)
            write_partial(jnp.where(rid < last_tile_rows, d, jnp.float32(0.0)))


def _rmse_jnp(pred, y):
    d = pred.astype(jnp.float32) - y.astype(jnp.float32)
    return jnp.sqrt(jnp.mean(d * d))


def rmse_loss(pred, y, *, use_pallas=None):
    """sqrt(mean((pred - y)**2)) over all elements, like torch.sqrt(MSELoss)."""
    assert pred.shape == y.shape, "pred and y must have the same shape"
    n = int(pred.size)
    if n == 0:
        return jnp.float32(jnp.nan)  # matches torch mean-MSE on empty input

    ip = jnp.dtype(pred.dtype).itemsize
    iy = jnp.dtype(y.dtype).itemsize

    if use_pallas is None:
        # Small-input fast path: fixed kernel launch + DMA setup dominates.
        use_pallas = n * (ip + iy) >= _MIN_PALLAS_BYTES
    if not use_pallas or n < _LANE:
        return _rmse_jnp(pred, y)

    p_flat = jnp.reshape(pred, (-1,))   # free reshape of contiguous data
    y_flat = jnp.reshape(y, (-1,))

    # Sub-128 tail (< 128 elements): sum it in plain JAX instead of padding
    # both full arrays.  (Only the rare ragged case even takes the slice.)
    rem = n % _LANE
    n_main = n - rem
    tail_ssq = jnp.float32(0.0)
    if rem:
        pt = p_flat[n_main:].astype(jnp.float32)
        yt = y_flat[n_main:].astype(jnp.float32)
        tail_ssq = jnp.sum((pt - yt) ** 2)
        p_flat = p_flat[:n_main]
        y_flat = y_flat[:n_main]
    rows = n_main // _LANE

    p2 = p_flat.reshape(rows, _LANE)
    y2 = y_flat.reshape(rows, _LANE)

    # Sublane-packing granularity: 8 rows (32-bit), 16 (16-bit), 32 (8-bit).
    sub = _SUBLANE * (4 // min(ip, iy, 4))

    # Tile by byte budget (~4 MiB per input block -> per-step overhead <6%).
    tile_rows = _TARGET_BLOCK_BYTES // (_LANE * max(ip, iy))
    tile_rows = max(sub, (tile_rows // sub) * sub)
    if rows <= tile_rows:
        if rows >= 2 * sub:
            # Keep >= 2 tiles so the "parallel" grid axis can shard across
            # both v7x TensorCores (no effect on single-TC v5e/v6e).
            half = -(-rows // 2)
            tile_rows = -(-half // sub) * sub
        else:
            tile_rows = rows        # one block == the full (tiny) array
    num_tiles = -(-rows // tile_rows)

    last_tile_rows = rows - (num_tiles - 1) * tile_rows
    if last_tile_rows == tile_rows:
        last_tile_rows = None       # no ragged tile -> fully unmasked kernel

    kernel = functools.partial(
        _partial_sq_diff_kernel,
        num_tiles=num_tiles, last_tile_rows=last_tile_rows)

    bytes_accessed = n_main * (ip + iy) + num_tiles * _SUBLANE * _LANE * 4

    partials = pl.pallas_call(
        kernel,
        out_shape=jax.ShapeDtypeStruct((num_tiles, _SUBLANE, _LANE), jnp.float32),
        grid_spec=pltpu.PrefetchScalarGridSpec(
            num_scalar_prefetch=0,
            grid=(num_tiles,),
            in_specs=[
                pl.BlockSpec((tile_rows, _LANE), lambda i: (i, 0)),
                pl.BlockSpec((tile_rows, _LANE), lambda i: (i, 0)),
            ],
            out_specs=pl.BlockSpec((None, _SUBLANE, _LANE), lambda i: (i, 0, 0)),
        ),
        compiler_params=pltpu.CompilerParams(
            dimension_semantics=("parallel",),
            vmem_limit_bytes=32 * 1024 * 1024,
        ),
        cost_estimate=pl.CostEstimate(
            flops=3 * n_main, transcendentals=0,
            bytes_accessed=int(bytes_accessed)),
    )(p2, y2)

    # Tiny final combine (num_tiles * 1024 scalars) + divide by the true
    # element count + sqrt, in plain JAX so the grid axis stays parallel.
    total_ssq = jnp.sum(partials) + tail_ssq
    return jnp.sqrt(total_ssq / jnp.float32(n))


if __name__ == "__main__":
    key = jax.random.PRNGKey(0)
    k1, k2, k3, k4 = jax.random.split(key, 4)

    # Small NCHW prediction / target tensors (as the AttnUnet loss sees them).
    pred = jax.random.normal(k1, (2, 4, 16, 16), dtype=jnp.float32)
    y = jax.random.normal(k2, (2, 4, 16, 16), dtype=jnp.float32)
    ref = jnp.sqrt(jnp.mean((pred - y) ** 2))

    # Force the Pallas path (the auto heuristic would route this small input
    # to the fused-XLA fast path).
    loss = rmse_loss(pred, y, use_pallas=True)
    jax.block_until_ready(loss)
    assert jnp.allclose(loss, ref, rtol=1e-5, atol=1e-6), (loss, ref)

    # Auto mode on the same small input -> small-input fast path.
    loss_auto = rmse_loss(pred, y)
    jax.block_until_ready(loss_auto)
    assert jnp.allclose(loss_auto, ref, rtol=1e-5, atol=1e-6), (loss_auto, ref)

    # bf16 inputs: DMA'd narrow into VMEM, upcast inside the kernel.
    pred_bf = jax.random.normal(k3, (2, 4, 16, 16), dtype=jnp.bfloat16)
    y_bf = jax.random.normal(k4, (2, 4, 16, 16), dtype=jnp.bfloat16)
    loss_bf = rmse_loss(pred_bf, y_bf, use_pallas=True)
    jax.block_until_ready(loss_bf)
    ref_bf = jnp.sqrt(jnp.mean(
        (pred_bf.astype(jnp.float32) - y_bf.astype(jnp.float32)) ** 2))
    assert jnp.allclose(loss_bf, ref_bf, rtol=1e-3, atol=1e-3), (loss_bf, ref_bf)

    # Ragged element count (n % 128 != 0): exercises the wrapper tail path.
    pred_r = jax.random.normal(k1, (3, 5, 7, 11), dtype=jnp.float32)
    y_r = jax.random.normal(k2, (3, 5, 7, 11), dtype=jnp.float32)
    loss_r = rmse_loss(pred_r, y_r, use_pallas=True)
    jax.block_until_ready(loss_r)
    ref_r = jnp.sqrt(jnp.mean((pred_r - y_r) ** 2))
    assert jnp.allclose(loss_r, ref_r, rtol=1e-5, atol=1e-6), (loss_r, ref_r)

    # Row count not a multiple of tile_rows: exercises the pl.when-gated
    # masked last tile (24 rows -> tiles of 16 + ragged 8).
    pred_m = jax.random.normal(k3, (2, 4, 16, 24), dtype=jnp.float32)
    y_m = jax.random.normal(k4, (2, 4, 16, 24), dtype=jnp.float32)
    loss_m = rmse_loss(pred_m, y_m, use_pallas=True)
    jax.block_until_ready(loss_m)
    ref_m = jnp.sqrt(jnp.mean((pred_m - y_m) ** 2))
    assert jnp.allclose(loss_m, ref_m, rtol=1e-5, atol=1e-6), (loss_m, ref_m)

    print("KERNEL_OK")
</pallas_src>

<mosaic_0001>
module attributes {stable_mosaic.version = 11 : i64} {
  func.func @_partial_sq_diff_kernel(%arg0: i32, %arg1: memref<8x128xf32, #tpu.memory_space<vmem>>, %arg2: memref<8x128xf32, #tpu.memory_space<vmem>>, %arg3: memref<1x8x128xf32, #tpu.memory_space<vmem>>) attributes {dimension_semantics = [#tpu.dimension_semantics<parallel>], iteration_bounds = array<i64: 2>, scalar_prefetch = 0 : i64, scratch_operands = 0 : i64, tpu.core_type = #tpu.core_type<tc>, window_params = [{transform_indices = @transform_0, window_bounds = array<i64: 8, 128>}, {transform_indices = @transform_1, window_bounds = array<i64: 8, 128>}, {transform_indices = @transform_2, window_bounds = array<i64: 1, 8, 128>}]} {
    %c0 = arith.constant 0 : index
    %c0_0 = arith.constant 0 : index
    %0 = vector.load %arg1[%c0, %c0_0] : memref<8x128xf32, #tpu.memory_space<vmem>>, vector<8x128xf32>
    %c0_1 = arith.constant 0 : index
    %c0_2 = arith.constant 0 : index
    %1 = vector.load %arg2[%c0_1, %c0_2] : memref<8x128xf32, #tpu.memory_space<vmem>>, vector<8x128xf32>
    %2 = arith.subf %0, %1 : vector<8x128xf32>
    %3 = arith.mulf %2, %2 : vector<8x128xf32>
    %cst = arith.constant dense<0.000000e+00> : vector<128xf32>
    %4 = vector.multi_reduction <add>, %3, %cst [0] : vector<8x128xf32> to vector<128xf32>
    %5 = vector.shape_cast %4 : vector<128xf32> to vector<1x128xf32>
    %6 = tpu.iota {dimensions = array<i32: 0>} : vector<8x128xi32>
    %c0_i32 = arith.constant 0 : i32
    %7 = vector.broadcast %c0_i32 : i32 to vector<8x128xi32>
    %8 = arith.cmpi eq, %6, %7 : vector<8x128xi32>
    %cst_3 = arith.constant 0.000000e+00 : f32
    %9 = vector.shape_cast %5 : vector<1x128xf32> to vector<1x128xf32>
    %10 = vector.broadcast %9 : vector<1x128xf32> to vector<8x128xf32>
    %11 = vector.broadcast %cst_3 : f32 to vector<8x128xf32>
    %12 = arith.select %8, %10, %11 : vector<8x128xi1>, vector<8x128xf32>
    %c0_4 = arith.constant 0 : index
    %c0_5 = arith.constant 0 : index
    %c0_6 = arith.constant 0 : index
    %13 = vector.load %arg3[%c0_4, %c0_5, %c0_6] : memref<1x8x128xf32, #tpu.memory_space<vmem>>, vector<1x8x128xf32>
    %14 = vector.shape_cast %13 : vector<1x8x128xf32> to vector<8x128xf32>
    %15 = vector.shape_cast %12 : vector<8x128xf32> to vector<1x8x128xf32>
    tpu.vector_store %arg3[%c0_4, %c0_5, %c0_6], %15 {strides = array<i32>} : memref<1x8x128xf32, #tpu.memory_space<vmem>>, vector<1x8x128xf32>,
    return
  }
  func.func @transform_0(%arg0: i32) -> (i32, i32) {
    %c0_i32 = arith.constant 0 : i32
    %c0_i32_0 = arith.constant 0 : i32
    return %arg0, %c0_i32 : i32, i32
  }
  func.func @transform_1(%arg0: i32) -> (i32, i32) {
    %c0_i32 = arith.constant 0 : i32
    %c0_i32_0 = arith.constant 0 : i32
    return %arg0, %c0_i32 : i32, i32
  }
  func.func @transform_2(%arg0: i32) -> (i32, i32, i32) {
    %c0_i32 = arith.constant 0 : i32
    %c0_i32_0 = arith.constant 0 : i32
    %c0_i32_1 = arith.constant 0 : i32
    return %arg0, %c0_i32, %c0_i32_0 : i32, i32, i32
  }
}

</mosaic_0001>

<bundles_post_ra>
// kernel: tpu_custom_call.1
= control target key start
LH: loop header
LB: loop body
LE: loop exit
PB: predicated region body
PF: predicated region fallthrough
CT: control target
= control target key end

     0   :  { %7 = vsyncpa [#allocation3], 0  ;;  %s743_s0 = inlined_call_operand.hbm [shape: f32[16,128], index: 0, kind: input, shape index: {}]   ;;  %s744_s1 = inlined_call_operand.hbm [shape: f32[16,128], index: 1, kind: input, shape index: {}]   ;;  %s745_s2 = inlined_call_operand.hbm [shape: f32[2,8,128], index: 2, kind: output, shape index: {}]  }
   0x1   :  { %9 = vsyncpa [#allocation3 + $0x1], 0 }
   0x2   :  { %10 = vsyncpa [#allocation6], 0 }
   0x3   :  { %12 = vsyncpa [#allocation6 + $0x1], 0 }
   0x4   :  { %13 = vsyncpa [#allocation4], 0 }
   0x5   :  { %15 = vsyncpa [#allocation4 + $0x1], 0  ;;  %s534_s9 = smov 0   ;;  %s536_s10 = smov 0  }
   0x6   :  { %s538_s11 = smov 0   ;;  %s540_s12 = smov 0  }
   0x7 LB: > { %s555_s13 = sadd.s32 4294967295, %s514_s12   ;;  %s318_s14 = sadd.s32 4294967294, %s514_s12   ;;  %s514_s12 = sphi %s540_s12, %s764_s12   ;;  %s510_s11 = sphi %s538_s11, %s763_s11   ;;  %s506_s10 = sphi %s536_s10, %s762_s10   ;;  %s502_s9 = sphi %s534_s9, %s761_s9  }
   0x8   : > { %s559_s15 = sadd.s32 1, %s514_s12   ;;  %s28_s16 = sadd.s32 1, %s510_s11 }
   0x9   : > { %s25_s17 = ssub.s32 %s514_s12, %s559_s15  ;;  %p35_p0 = scmp.ne.s32.totalorder %s510_s11, %s506_s10 }
   0xa   : > { %p26_p1 = scmp.eq.s32.totalorder %s25_s17, 0  ;;  %p36_p2 = scmp.eq.s32.totalorder %s514_s12, 0 }
   0xb   : > { %p41_p3 = scmp.ne.s32.totalorder %s506_s10, %s502_s9  ;;  %p42_p4 = scmp.eq.s32.totalorder %s555_s13, 0 }
   0xc   : > { %s571_s18 = scalar_select %p26_p1, %s510_s11, %s28_s16  }
   0xd   : > { %p573_p5 = por %p36_p2, %p35_p0  ;;  %p577_p6 = por %p42_p4, %p41_p3 }
   0xe   : > { %p91_p7 = scmp.eq.s32.totalorder %s555_s13, 1  ;;  %p97_p8 = scmp.eq.s32.totalorder %s318_s14, 1 }
   0xf   : > { %s749_s20 = scalar_select %p577_p6, 1, 0 }
  0x10   : > { %p350_p10 = scmp.lt.s32.totalorder %s514_s12, 2  ;;  %p584_p11 = por %p91_p7, %p35_p0 }
  0x11   : > { %p588_p12 = por %p97_p8, %p41_p3  ;;  %s593_s23 = sand.u32 1, %s510_s11  }
  0x12   : > { %s750_s21 = scalar_select %p584_p11, 1, 0 }
  0x13   : > { %s751_s22 = scalar_select %p588_p12, 1, 0 }
  0x14   : > { %s322_s24 = sshll.u32 %s514_s12, 7  ;;  %s321_s25 = sshll.u32 %s593_s23, 3 }
  0x15   : > { %s602_s28 = scalar_lea.hbm %s743_s0, %s322_s24  ;;  %s121_s29 = scalar_lea.vmem [#allocation2], %s321_s25 }
  0x16   : > { %s128_s30 = sshll.u32 %s121_s29, 4  ;;  %p608_p13 = pnand %p350_p10, %p573_p5  ;;  %s612_s30 = int_to_ptr.vmem [resolvable:$true] %s128_s30 }
  0x17   : > { %s118_s4 = scalar_lea.sflag [#allocation3], %s593_s23  ;;  %s384_s5 = scalar_lea.hbm %s602_s28, 128 }
  0x18   : > { %p385_p2 = scmp.ne.s32.totalorder %s602_s28, %s384_s5  ;;  %p386_p3 = pneg %p608_p13 }
  0x19   : > { %s389_s8 = scalar_lea.hbm %s743_s0, 256  ;;  %p390_p5 = scmp.lt.u32.totalorder %s602_s28, %s743_s0 }
  0x1a   : > { %p387_p4 = pnand %p386_p3, %p385_p2  ;;  %p391_p8 = scmp.lt.u32.totalorder %s389_s8, %s384_s5 }
  0x1b   : > { %p393_p9 = scmp.lt.u32.totalorder %s384_s5, %s602_s28 }
  0x1c   : > { %p388_p7 = pneg %p387_p4  ;;  %p392_p10 = por %p391_p8, %p390_p5 }
  0x1e   : > { %p394_p0 = por %p393_p9, %p392_p10 }
  0x20   : > { %p395_p1 = pnand %p394_p0, %p388_p7 }
  0x22   : > { %398 = shalt.err (!%p395_p1)
}
  0x23   : > { %s399_s17 = scalar_lea.vmem %s612_s30, 128  ;;  %s516_s19 = smov [#allocation2]  }
  0x24   : > { %p400_p2 = scmp.ne.s32.totalorder %s612_s30, %s399_s17  ;;  %s404_s26 = sshll.u32 %s516_s19, 4  ;;  %s405_s26 = int_to_ptr.vmem [resolvable:$false] %s404_s26 }
  0x25   : > { %s406_s27 = scalar_lea.vmem %s405_s26, 256  ;;  %p407_p11 = scmp.lt.s32.totalorder %s612_s30, %s405_s26 }
  0x26   : > { %p402_p4 = pnand %p400_p2, %p386_p3  ;;  %p408_p5 = scmp.lt.s32.totalorder %s406_s27, %s399_s17 }
  0x28   : > { %p403_p12 = pneg %p402_p4  ;;  %p409_p8 = por %p408_p5, %p407_p11 }
  0x2a   : > { %p410_p9 = pnand %p409_p8, %p403_p12 }
  0x2c   : > { %413 = shalt.err (!%p410_p9)
}
  0x2d   : > { %342 = dma.hbm_to_vmem [thread:$0]  (!%p608_p13), %s602_s28, 128, %s612_s30, %s118_s4  }
  0x2e   : > { %p753_p0 = scmp.lt.s32.totalorder %s514_s12, 3  ;;  %p754_p1 = scmp.ge.s32.totalorder %s514_s12, 1 }
  0x2f   : > { %s655_s7 = scalar_lea.hbm %s744_s1, %s322_s24  ;;  %s139_s8 = scalar_lea.vmem [#allocation5], %s321_s25 }
  0x30   : > { %p646_p7 = pnand %p754_p1, %p753_p0  ;;  %s146_s14 = sshll.u32 %s139_s8, 4  ;;  %s147_s14 = int_to_ptr.vmem [resolvable:$true] %s146_s14 }
  0x31   : > { %s136_s28 = scalar_lea.sflag [#allocation6], %s593_s23  ;;  %s414_s30 = scalar_lea.hbm %s655_s7, 128 }
  0x32   : > { %s755_s29 = scalar_select %p646_p7, 1, 0 }
  0x33   : > { %p415_p11 = scmp.ne.s32.totalorder %s655_s7, %s414_s30  ;;  %s419_s24 = scalar_lea.hbm %s744_s1, 256 }
  0x34   : > { %p420_p2 = scmp.lt.u32.totalorder %s655_s7, %s744_s1  ;;  %p421_p4 = scmp.lt.u32.totalorder %s419_s24, %s414_s30 }
  0x35   : > { %p417_p12 = pnand %p415_p11, %p386_p3  ;;  %p423_p8 = scmp.lt.u32.totalorder %s414_s30, %s655_s7 }
  0x36   : > { %p422_p5 = por %p421_p4, %p420_p2 }
  0x37   : > { %p418_p10 = pneg %p417_p12 }
  0x38   : > { %p424_p9 = por %p423_p8, %p422_p5 }
  0x3a   : > { %p425_p0 = pnand %p424_p9, %p418_p10 }
  0x3c   : > { %428 = shalt.err (!%p425_p0)
}
  0x3d   : > { %s429_s23 = scalar_lea.vmem %s147_s14, 128  ;;  %s517_s25 = smov [#allocation5]  }
  0x3e   : > { %p430_p1 = scmp.ne.s32.totalorder %s147_s14, %s429_s23  ;;  %s434_s26 = sshll.u32 %s517_s25, 4  ;;  %s435_s26 = int_to_ptr.vmem [resolvable:$false] %s434_s26 }
  0x3f   : > { %s436_s27 = scalar_lea.vmem %s435_s26, 256  ;;  %p437_p6 = scmp.lt.s32.totalorder %s147_s14, %s435_s26 }
  0x40   : > { %p432_p11 = pnand %p430_p1, %p386_p3  ;;  %p438_p7 = scmp.lt.s32.totalorder %s436_s27, %s429_s23 }
  0x42   : > { %p433_p12 = pneg %p432_p11  ;;  %p439_p2 = por %p438_p7, %p437_p6 }
  0x44   : > { %p440_p4 = pnand %p439_p2, %p433_p12 }
  0x46   : > { %443 = shalt.err (!%p440_p4)
}
  0x47   : > { %345 = dma.hbm_to_vmem [thread:$0]  (!%p608_p13), %s655_s7, 128, %s147_s14, %s136_s28  }
  0x48   : > { %p756_p10 = scmp.ne.s32.totalorder %s755_s29, 0 }
  0x49   : > { %s682_s5 = sand.u32 (!%p756_p10), 1, %s506_s10   ;;  %p757_p3 = scmp.ne.s32.totalorder (!%p756_p10), %s749_s20, 0 }
  0x4a   : > { %155 = sbr.rel (%p756_p10) target bundleno = 116 (0x74), region = 28  ;;  %s326_s6 = sshll.u32 (!%p756_p10), %s682_s5, 3 }
  0x4b   : > { %s158_s8 = scalar_lea.sflag (!%p756_p10), [#allocation3], %s682_s5  ;;  %s161_s30 = scalar_lea.vmem (!%p756_p10), [#allocation2], %s326_s6 }
  0x51   : > { %489 = dma.done.wait (%p757_p3), %s158_s8, 128  }
  0x52   : > { %491 = vsyncadd (%p757_p3), %s158_s8, 4294967168  ;;  %s167_s3 = scalar_lea.sflag [#allocation6], %s682_s5  ;;  %s170_s7 = scalar_lea.vmem [#allocation5], %s326_s6 }
  0x53   : > { %493 = dma.done.wait (%p757_p3), %s167_s3, 128  }
  0x54   : > { %495 = vsyncadd (%p757_p3), %s167_s3, 4294967168  ;;  %v196_v0 = vld [vmem:[%s161_s30] sm:$0xff]  ;;  %v197_v1 = vld [vmem:[%s170_s7] sm:$0xff]  ;;  %v206_v5 = vlaneseq  ;;  %s195_s29 = scalar_lea.vmem [#allocation7], %s326_s6  ;;  %s330_s28 = sshll.u32 %s555_s13, 7 }
  0x55   : > { %v198_v2 = vsub.f32 %v196_v0, %v197_v1  ;;  %s225_s14 = sshll.u32 %s195_s29, 4  ;;  %s701_s16 = scalar_lea.hbm %s745_s2, %s330_s28  ;;  %s696_s14 = int_to_ptr.vmem [resolvable:$true] %s225_s14 }
  0x56   : > { %v207_v8 = vshrl.u32 %v206_v5, 7  ;;  %s212_s24 = scalar_lea.sflag [#allocation4], %s682_s5  ;;  %s444_s17 = scalar_lea.vmem %s696_s14, 128 }
  0x57   : > { %v199_v3 = vmul.f32 %v198_v2, %v198_v2  ;;  %p445_p6 = scmp.ne.s32.totalorder %s696_s14, %s444_s17  ;;  %p758_p13 = scmp.ne.s32.totalorder %s750_s21, 0 }
  0x58   : > { %vm208_vm0 = vcmp.eq.s32.totalorder %v207_v8, 0  ;;  %s518_s13 = smov [#allocation7]  }
  0x59   : > { %v200_v4 = vrot.slane %v199_v3, 4  ;;  %p446_p7 = pnand %p445_p6, %p758_p13  ;;  %s448_s19 = sshll.u32 %s518_s13, 4  ;;  %s449_s19 = int_to_ptr.vmem [resolvable:$false] %s448_s19 }
  0x5a   : > { %s450_s23 = scalar_lea.vmem %s449_s19, 256  ;;  %p451_p8 = scmp.lt.s32.totalorder %s696_s14, %s449_s19 }
  0x5b   : > { %v201_v6 = vadd.f32 %v200_v4, %v199_v3  ;;  %p447_p5 = pneg %p446_p7  ;;  %p452_p9 = scmp.lt.s32.totalorder %s450_s23, %s444_s17 }
  0x5d   : > { %v202_v7 = vrot.slane %v201_v6, 2  ;;  %p453_p0 = por %p452_p9, %p451_p8 }
  0x5f   : > { %v203_v9 = vadd.f32 %v202_v7, %v201_v6  ;;  %p454_p1 = pnand %p453_p0, %p447_p5 }
  0x61   : > { %v204_v10 = vrot.slane %v203_v9, 1 }
  0x63   : > { %v205_v11 = vadd.f32 %v204_v10, %v203_v9 }
  0x65   : > { %v209_v12 = vsel %vm208_vm0, %v205_v11, 0.0 }
  0x66   : > { %210 = vst [vmem:[%s195_s29] sm:$0xff] %v209_v12 }
  0x67   : > { %457 = shalt.err (!%p454_p1)
}
  0x68   : > { %s458_s25 = scalar_lea.hbm %s701_s16, 128  ;;  %s462_s5 = scalar_lea.hbm %s745_s2, 256 }
  0x69   : > { %p459_p11 = scmp.ne.s32.totalorder %s701_s16, %s458_s25  ;;  %p463_p4 = scmp.lt.u32.totalorder %s701_s16, %s745_s2 }
  0x6a   : > { %p464_p10 = scmp.lt.u32.totalorder %s462_s5, %s458_s25  ;;  %p466_p6 = scmp.lt.u32.totalorder %s458_s25, %s701_s16 }
  0x6b   : > { %p460_p12 = pnand %p459_p11, %p758_p13 }
  0x6c   : > { %p465_p3 = por %p464_p10, %p463_p4 }
  0x6d   : > { %p461_p2 = pneg %p460_p12 }
  0x6e   : > { %p467_p7 = por %p466_p6, %p465_p3 }
  0x70   : > { %p468_p5 = pnand %p467_p7, %p461_p2 }
  0x72   : > { %471 = shalt.err (!%p468_p5)
}
  0x73   : > { %337 = dma.vmem_to_hbm [thread:$0]  (%p758_p13), %s696_s14, 128, %s701_s16, %s212_s24  }
  0x74 PF: > { %s237_s30 = sand.u32 1, %s502_s9   ;;  %p759_p8 = scmp.ne.s32.totalorder %s751_s22, 0 }
  0x75   : > { %p760_p9 = scmp.ge.s32.totalorder %s514_s12, 2  ;;  %s238_s3 = scalar_lea.sflag [#allocation4], %s237_s30 }
  0x77   : > { %p347_p0 = pnand %p760_p9, %p759_p8 }
  0x79   : > { %497 = dma.done.wait (!%p347_p0), %s238_s3, 128  }
  0x7a   : > { %499 = vsyncadd (!%p347_p0), %s238_s3, 4294967168  ;;  %p18_p1 = scmp.ge.s32.totalorder %s559_s15, 4   ;;  %s761_s9 = smov %s506_s10 }
  0x7b   : > { %s762_s10 = smov %s510_s11  ;;  %s763_s11 = smov %s571_s18 }
  0x7c   : > { %s764_s12 = smov %s559_s15  ;;  %20 = sbr.rel (!%p18_p1) target bundleno = 7 (0x7), region = 86 }
  0x83   :  { %243 = vsyncpa [#allocation3], 1 }
  0x84   :  { %245 = vsyncpa [#allocation3 + $0x1], 1 }
  0x85   :  { %246 = vsyncpa [#allocation6], 1 }
  0x86   :  { %248 = vsyncpa [#allocation6 + $0x1], 1 }
  0x87   :  { %249 = vsyncpa [#allocation4], 1 }
  0x88   :  { %251 = vsyncpa [#allocation4 + $0x1], 1 }

</bundles_post_ra>
